<compile_context>
chip_gen: v6e
topology: v6e:2x2x1
jax: 0.10.0
libtpu: 0.0.40
codegen_flags: <defaults>
</compile_context>

<pallas_src>
import jax
import jax.numpy as jnp
from jax import lax
from jax.experimental import pallas as pl
from jax.experimental.pallas import tpu as pltpu

EPS = 1e-3                      # nn.BatchNorm2d(out_channels, eps=0.001)
LANE = 128
VMEM_LIMIT = 32 * 1024 * 1024   # safe on v5e/v6e/v7x; per-call usage here is far below this
N_CORE_SPLIT = 2                # leading "parallel" axis of pass 1 (megacore on v7x)


def _round_up(x, m):
    return (x + m - 1) // m * m


def _conv_stats_kernel(patches_ref, w_ref, conv_ref, stats_ref):
    """Pass 1: conv tile (MXU, f32 acc), cache bf16 activation, accumulate per-channel
    sum / sum-of-squares into this core's resident (1, 2, Cp) statistics block."""
    @pl.when(pl.program_id(1) == 0)
    def _():
        stats_ref[...] = jnp.zeros_like(stats_ref)

    conv = jnp.dot(patches_ref[...], w_ref[...],
                   preferred_element_type=jnp.float32)            # (TILE_M, Cp) f32
    conv_bf16 = conv.astype(jnp.bfloat16)
    conv_ref[...] = conv_bf16                                     # cached activation

    # Statistics over the exact values pass 2 will normalize (bf16-rounded, widened to f32).
    c = conv_bf16.astype(jnp.float32)
    upd = jnp.concatenate(
        [jnp.sum(c, axis=0, keepdims=True),                       # (1, Cp) sum
         jnp.sum(c * c, axis=0, keepdims=True)],                  # (1, Cp) sum of squares
        axis=0,
    )                                                             # (2, Cp)
    stats_ref[...] = stats_ref[...] + upd[None]                   # (1, 2, Cp)


def _bn_relu_kernel(conv_ref, scale_ref, shift_ref, out_ref):
    """Pass 2: element-wise folded BN affine + ReLU on the cached activation (lane-dense)."""
    y = conv_ref[...].astype(jnp.float32) * scale_ref[...] + shift_ref[...]
    out_ref[...] = jnp.maximum(y, 0.0).astype(out_ref.dtype)


def basic_conv2d_forward(x, conv_weight, gamma, beta, *, padding=1, tile_m=512):
    """x: (N, C_in, H, W) NCHW; conv_weight: (C_out, C_in, KH, KW) OIHW (stride 1).

    tile_m: rows of the im2col matrix per grid step (512-1024 is a good default for
    realistic layers; any multiple of 8 works)."""
    N, Cin, H, W = x.shape
    Cout, _, KH, KW = conv_weight.shape
    Ho = H + 2 * padding - KH + 1
    Wo = W + 2 * padding - KW + 1

    M = N * Ho * Wo
    K = Cin * KH * KW
    Kp = _round_up(K, LANE)
    Cp = _round_up(Cout, LANE)
    Mp = _round_up(M, tile_m * N_CORE_SPLIT)
    n_tiles = Mp // tile_m
    tiles_per_core = n_tiles // N_CORE_SPLIT

    # --- glue: im2col (ordering matches conv_weight.reshape(Cout, Cin*KH*KW)) ---
    xp = jnp.pad(x, ((0, 0), (0, 0), (padding, padding), (padding, padding)))
    patches = jnp.stack(
        [jnp.stack([xp[:, :, i:i + Ho, j:j + Wo] for j in range(KW)], axis=-1)
         for i in range(KH)],
        axis=-2,
    )  # (N, Cin, Ho, Wo, KH, KW)
    patches = patches.transpose(0, 2, 3, 1, 4, 5).reshape(M, K)
    # Zero-pad K->Kp (unmasked MXU passes) and M->Mp (whole tiles; zero rows add nothing to
    # the statistics); cast to bf16 (MXU-peak dtype, halves patch HBM traffic / VMEM).
    patches = jnp.pad(patches, ((0, Mp - M), (0, Kp - K))).astype(jnp.bfloat16)

    wmat = conv_weight.reshape(Cout, K).T                               # (K, Cout)
    wmat = jnp.pad(wmat, ((0, Kp - K), (0, Cp - Cout))).astype(jnp.bfloat16)

    # --- pass 1: conv + activation cache + per-core BN statistics ---------------
    conv_cache, stats_parts = pl.pallas_call(
        _conv_stats_kernel,
        out_shape=(
            jax.ShapeDtypeStruct((Mp, Cp), jnp.bfloat16),               # cached conv act
            jax.ShapeDtypeStruct((N_CORE_SPLIT, 2, Cp), jnp.float32),   # per-core sum / sumsq
        ),
        grid=(N_CORE_SPLIT, tiles_per_core),
        in_specs=[
            pl.BlockSpec((tile_m, Kp), lambda c, i: (c * tiles_per_core + i, 0)),
            pl.BlockSpec((Kp, Cp), lambda c, i: (0, 0)),                # resident weights
        ],
        out_specs=(
            pl.BlockSpec((tile_m, Cp), lambda c, i: (c * tiles_per_core + i, 0)),
            pl.BlockSpec((1, 2, Cp), lambda c, i: (c, 0, 0)),           # per-core accumulator
        ),
        compiler_params=pltpu.CompilerParams(
            dimension_semantics=("parallel", "arbitrary"),              # megacore x M-reduction
            vmem_limit_bytes=VMEM_LIMIT),
    )(patches, wmat)

    # --- tiny glue: combine partial stats, fold mean/var/gamma/beta into scale/shift ---
    stats = jnp.sum(stats_parts, axis=0)                                # (2, Cp)
    m_true = jnp.float32(M)                                             # padded rows add 0
    mean = stats[0:1, :] / m_true                                       # (1, Cp)
    var = jnp.maximum(stats[1:2, :] / m_true - mean * mean, 0.0)        # biased, >= 0
    inv_std = lax.rsqrt(var + EPS)
    gamma_p = jnp.pad(gamma.astype(jnp.float32), (0, Cp - Cout)).reshape(1, Cp)
    beta_p = jnp.pad(beta.astype(jnp.float32), (0, Cp - Cout)).reshape(1, Cp)
    scale = gamma_p * inv_std                                           # (1, Cp)
    shift = beta_p - mean * scale                                       # (1, Cp)

    # --- pass 2: element-wise BN affine + ReLU over the cached activation -------
    out = pl.pallas_call(
        _bn_relu_kernel,
        out_shape=jax.ShapeDtypeStruct((Mp, Cp), jnp.float32),
        grid=(n_tiles,),
        in_specs=[
            pl.BlockSpec((tile_m, Cp), lambda i: (i, 0)),
            pl.BlockSpec((1, Cp), lambda i: (0, 0)),
            pl.BlockSpec((1, Cp), lambda i: (0, 0)),
        ],
        out_specs=pl.BlockSpec((tile_m, Cp), lambda i: (i, 0)),
        compiler_params=pltpu.CompilerParams(
            dimension_semantics=("parallel",),                          # fully parallel
            vmem_limit_bytes=VMEM_LIMIT),
    )(conv_cache, scale, shift)

    # --- glue: slice off padding, back to NCHW ----------------------------------
    # TODO(synk): keep NHWC end-to-end to drop this transpose if the consumer allows.
    return out[:M, :Cout].reshape(N, Ho, Wo, Cout).transpose(0, 3, 1, 2)


def _reference(x, conv_weight, gamma, beta, *, padding=1):
    conv = lax.conv_general_dilated(
        x, conv_weight, window_strides=(1, 1),
        padding=((padding, padding), (padding, padding)),
        dimension_numbers=("NCHW", "OIHW", "NCHW"),
    )
    mean = conv.mean(axis=(0, 2, 3), keepdims=True)
    var = conv.var(axis=(0, 2, 3), keepdims=True)   # biased, matches torch training-mode BN
    g = gamma.reshape(1, -1, 1, 1)
    b = beta.reshape(1, -1, 1, 1)
    return jnp.maximum((conv - mean) / jnp.sqrt(var + EPS) * g + b, 0.0)


if __name__ == "__main__":
    # Shapes consistent with BasicConv2d(in_channels=4, out_channels=8, kernel_size=3,
    # padding=1) applied to a (2, 4, 16, 16) NCHW input.
    N, Cin, Cout, H, W, KH, KW = 2, 4, 8, 16, 16, 3, 3

    key = jax.random.PRNGKey(0)
    kx, kw, kg, kb = jax.random.split(key, 4)
    x = jax.random.normal(kx, (N, Cin, H, W), dtype=jnp.float32)
    conv_weight = jax.random.normal(kw, (Cout, Cin, KH, KW), dtype=jnp.float32) * 0.1
    gamma = 1.0 + 0.1 * jax.random.normal(kg, (Cout,), dtype=jnp.float32)
    beta = 0.1 * jax.random.normal(kb, (Cout,), dtype=jnp.float32)

    # tile_m=128 so the small test exercises multiple M tiles per core (M = 512 -> 4 tiles,
    # 2 per parallel chunk) and the cross-tile / cross-core BN-statistics accumulation path.
    out = basic_conv2d_forward(x, conv_weight, gamma, beta, padding=1, tile_m=128)
    out = jax.block_until_ready(out)

    ref = _reference(x, conv_weight, gamma, beta, padding=1)
    assert out.shape == (N, Cout, H, W), out.shape
    # bf16 MXU inputs + bf16 cached activation with f32 stats -> mixed-precision tolerance.
    assert jnp.allclose(out, ref, rtol=5e-2, atol=5e-2), float(jnp.max(jnp.abs(out - ref)))

    print("KERNEL_OK")
</pallas_src>

<mosaic_0001>
module attributes {stable_mosaic.version = 11 : i64} {
  func.func @_conv_stats_kernel(%arg0: i32, %arg1: i32, %arg2: memref<128x128xbf16, #tpu.memory_space<vmem>>, %arg3: memref<128x128xbf16, #tpu.memory_space<vmem>>, %arg4: memref<128x128xbf16, #tpu.memory_space<vmem>>, %arg5: memref<1x2x128xf32, #tpu.memory_space<vmem>>) attributes {dimension_semantics = [#tpu.dimension_semantics<parallel>, #tpu.dimension_semantics<arbitrary>], iteration_bounds = array<i64: 2, 2>, scalar_prefetch = 0 : i64, scratch_operands = 0 : i64, tpu.core_type = #tpu.core_type<tc>, window_params = [{transform_indices = @transform_0, window_bounds = array<i64: 128, 128>}, {pipeline_mode = #tpu.pipeline_mode<synchronous>, transform_indices = @transform_1, window_bounds = array<i64: 128, 128>}, {transform_indices = @transform_2, window_bounds = array<i64: 128, 128>}, {transform_indices = @transform_3, window_bounds = array<i64: 1, 2, 128>}]} {
    %c0_i32 = arith.constant 0 : i32
    %0 = arith.cmpi eq, %arg1, %c0_i32 : i32
    %1 = arith.extui %0 : i1 to i32
    %c0_i32_0 = arith.constant 0 : i32
    %2 = arith.cmpi ne, %1, %c0_i32_0 : i32
    scf.if %2 {
      %cst_14 = arith.constant 0.000000e+00 : f32
      %19 = vector.broadcast %cst_14 : f32 to vector<1x2x128xf32>
      %c0_15 = arith.constant 0 : index
      %c0_16 = arith.constant 0 : index
      %c0_17 = arith.constant 0 : index
      %20 = vector.load %arg5[%c0_15, %c0_16, %c0_17] : memref<1x2x128xf32, #tpu.memory_space<vmem>>, vector<1x2x128xf32>
      tpu.vector_store %arg5[%c0_15, %c0_16, %c0_17], %19 {strides = array<i32>} : memref<1x2x128xf32, #tpu.memory_space<vmem>>, vector<1x2x128xf32>,
    } else {
    }
    %c0 = arith.constant 0 : index
    %c0_1 = arith.constant 0 : index
    %3 = vector.load %arg2[%c0, %c0_1] : memref<128x128xbf16, #tpu.memory_space<vmem>>, vector<128x128xbf16>
    %c0_2 = arith.constant 0 : index
    %c0_3 = arith.constant 0 : index
    %4 = vector.load %arg3[%c0_2, %c0_3] : memref<128x128xbf16, #tpu.memory_space<vmem>>, vector<128x128xbf16>
    %cst = arith.constant dense<0.000000e+00> : vector<128x128xf32>
    %5 = tpu.matmul %3, %4, %cst {dimension_numbers = #tpu.dot_dimension_numbers<[1], [0], [0], [1], [0, 0, 1, 1], [], []>} : vector<128x128xbf16>, vector<128x128xbf16>, vector<128x128xf32> -> vector<128x128xf32>
    %6 = arith.truncf %5 : vector<128x128xf32> to vector<128x128xbf16>
    %c0_4 = arith.constant 0 : index
    %c0_5 = arith.constant 0 : index
    %7 = vector.load %arg4[%c0_4, %c0_5] : memref<128x128xbf16, #tpu.memory_space<vmem>>, vector<128x128xbf16>
    tpu.vector_store %arg4[%c0_4, %c0_5], %6 {strides = array<i32>} : memref<128x128xbf16, #tpu.memory_space<vmem>>, vector<128x128xbf16>,
    %8 = arith.extf %6 : vector<128x128xbf16> to vector<128x128xf32>
    %cst_6 = arith.constant dense<0.000000e+00> : vector<128xf32>
    %9 = vector.multi_reduction <add>, %8, %cst_6 [0] : vector<128x128xf32> to vector<128xf32>
    %10 = vector.shape_cast %9 : vector<128xf32> to vector<1x128xf32>
    %11 = arith.mulf %8, %8 : vector<128x128xf32>
    %cst_7 = arith.constant dense<0.000000e+00> : vector<128xf32>
    %12 = vector.multi_reduction <add>, %11, %cst_7 [0] : vector<128x128xf32> to vector<128xf32>
    %13 = vector.shape_cast %12 : vector<128xf32> to vector<1x128xf32>
    %14 = tpu.concatenate %10, %13 in 0 : vector<1x128xf32>, vector<1x128xf32> -> vector<2x128xf32>
    %c0_8 = arith.constant 0 : index
    %c0_9 = arith.constant 0 : index
    %c0_10 = arith.constant 0 : index
    %15 = vector.load %arg5[%c0_8, %c0_9, %c0_10] : memref<1x2x128xf32, #tpu.memory_space<vmem>>, vector<1x2x128xf32>
    %16 = vector.shape_cast %14 : vector<2x128xf32> to vector<1x2x128xf32>
    %17 = arith.addf %15, %16 : vector<1x2x128xf32>
    %c0_11 = arith.constant 0 : index
    %c0_12 = arith.constant 0 : index
    %c0_13 = arith.constant 0 : index
    %18 = vector.load %arg5[%c0_11, %c0_12, %c0_13] : memref<1x2x128xf32, #tpu.memory_space<vmem>>, vector<1x2x128xf32>
    tpu.vector_store %arg5[%c0_11, %c0_12, %c0_13], %17 {strides = array<i32>} : memref<1x2x128xf32, #tpu.memory_space<vmem>>, vector<1x2x128xf32>,
    return
  }
  func.func @transform_0(%arg0: i32, %arg1: i32) -> (i32, i32) {
    %c2_i32 = arith.constant 2 : i32
    %0 = arith.muli %arg0, %c2_i32 : i32
    %1 = arith.addi %0, %arg1 : i32
    %c0_i32 = arith.constant 0 : i32
    %c0_i32_0 = arith.constant 0 : i32
    return %1, %c0_i32 : i32, i32
  }
  func.func @transform_1(%arg0: i32, %arg1: i32) -> (i32, i32) {
    %c0_i32 = arith.constant 0 : i32
    %c0_i32_0 = arith.constant 0 : i32
    %c0_i32_1 = arith.constant 0 : i32
    return %c0_i32, %c0_i32_0 : i32, i32
  }
  func.func @transform_2(%arg0: i32, %arg1: i32) -> (i32, i32) {
    %c2_i32 = arith.constant 2 : i32
    %0 = arith.muli %arg0, %c2_i32 : i32
    %1 = arith.addi %0, %arg1 : i32
    %c0_i32 = arith.constant 0 : i32
    %c0_i32_0 = arith.constant 0 : i32
    return %1, %c0_i32 : i32, i32
  }
  func.func @transform_3(%arg0: i32, %arg1: i32) -> (i32, i32, i32) {
    %c0_i32 = arith.constant 0 : i32
    %c0_i32_0 = arith.constant 0 : i32
    %c0_i32_1 = arith.constant 0 : i32
    return %arg0, %c0_i32, %c0_i32_0 : i32, i32, i32
  }
}

</mosaic_0001>

<bundles_post_ra>
// kernel: tpu_custom_call.1
= control target key start
LH: loop header
LB: loop body
LE: loop exit
PB: predicated region body
PF: predicated region fallthrough
CT: control target
= control target key end

     0   :  { %s1682_s0 = inlined_call_operand.hbm [shape: bf16[512,128], index: 0, kind: input, shape index: {}]   ;;  %s1683_s1 = inlined_call_operand.hbm [shape: bf16[128,128], index: 1, kind: input, shape index: {}]   ;;  %s1684_s2 = inlined_call_operand.hbm [shape: bf16[512,128], index: 2, kind: output, shape index: {0}]   ;;  %s1685_s3 = inlined_call_operand.hbm [shape: f32[2,2,128], index: 3, kind: output, shape index: {1}]  }
   0x1   :  { %1703 = sst [smem:[#allocation23_spill]] %s1683_s1 }
   0x2   :  { %1704 = sst [smem:[#allocation24_spill]] %s1684_s2 }
   0x3   :  { %1705 = sst [smem:[#allocation25_spill]] %s1685_s3 }
   0x4   :  { %9 = vsyncpa [#allocation3], 0 }
   0x5   :  { %11 = vsyncpa [#allocation3 + $0x1], 0 }
   0x6   :  { %12 = vsyncpa [#allocation6], 0 }
   0x7   :  { %13 = vsyncpa [#allocation4], 0 }
   0x8   :  { %15 = vsyncpa [#allocation4 + $0x1], 0 }
   0x9   :  { %16 = vsyncpa [#allocation9], 0 }
   0xa   :  { %18 = vsyncpa [#allocation9 + $0x1], 0  ;;  %s1363_s12 = smov 0   ;;  %s1365_s13 = smov 0  }
   0xb   :  { %s1367_s14 = smov 0   ;;  %s1369_s15 = smov 0  }
   0xc   :  { %s1371_s16 = smov 0   ;;  %s1373_s17 = smov 0  }
   0xd   :  { %s1375_s18 = smov 0   ;;  %s1377_s19 = smov 0  }
   0xe   :  { %s1379_s20 = smov 0   ;;  %s1381_s21 = smov 0  }
   0xf   :  { %s1383_s22 = smov 0  }
  0x10 LB: > { %1706 = sst [smem:[#allocation14_spill]] %s1292_s12  ;;  %s797_s23 = sadd.s32 4294967295, %s1332_s22   ;;  %s1332_s22 = sphi %s1383_s22, %s24_s22   ;;  %s1328_s21 = sphi %s1381_s21, %s1754_s21   ;;  %s1324_s20 = sphi %s1379_s20, %s1753_s20   ;;  %s1320_s19 = sphi %s1377_s19, %s1752_s19   ;;  %s1316_s18 = sphi %s1375_s18, %s1744_s18   ;;  %s1312_s17 = sphi %s1373_s17, %s1751_s17   ;;  %s1308_s16 = sphi %s1371_s16, %s1750_s16   ;;  %s1304_s15 = sphi %s1369_s15, %s1749_s15   ;;  %s1300_s14 = sphi %s1367_s14, %s1748_s14   ;;  %s1296_s13 = sphi %s1365_s13, %s1747_s13   ;;  %s1292_s12 = sphi %s1363_s12, %s1746_s12  }
  0x11   : > { %1707 = sst [smem:[#allocation15_spill]] %s1304_s15  ;;  %s798_s24 = sadd.s32 4294967294, %s1332_s22  }
  0x12   : > { %1708 = sst [smem:[#allocation16_spill]] %s1320_s19  ;;  %p60_p0 = scmp.ne.s32.totalorder %s1308_s16, %s1304_s15 }
  0x13   : > { %1709 = sst [smem:[#allocation17_spill]] %s1324_s20  ;;  %p1422_p1 = scmp.eq.s32.totalorder %s797_s23, 0 }
  0x14   : > { %p1426_p2 = scmp.eq.s32.totalorder %s797_s23, 3  ;;  %p115_p3 = scmp.eq.s32.totalorder %s798_s24, 3 }
  0x15   : > { %p1432_p4 = por %p1422_p1, %p60_p0  ;;  %p134_p6 = scmp.ne.s32.totalorder %s1300_s14, %s1296_s13 }
  0x16   : > { %p1437_p5 = por %p115_p3, %p60_p0  ;;  %p140_p7 = scmp.ne.s32.totalorder %s1296_s13, %s1292_s12 }
  0x17   : > { %s1712_s27 = scalar_select %p1432_p4, 1, 0 }
  0x18   : > { %s1713_s29 = scalar_select %p1437_p5, 1, 0 }
  0x19   : > { %p803_p8 = scmp.ge.s32.totalorder %s1332_s22, 1  ;;  %p1448_p9 = por %p134_p6, %p1426_p2 }
  0x1a   : > { %1714 = sst [smem:[#allocation18_spill]] %s1713_s29  ;;  %p148_p10 = scmp.lt.s32.totalorder %s1332_s22, 5 }
  0x1b   : > { %s1715_s30 = scalar_select %p1448_p9, 1, 0 }
  0x1c   : > { %p1453_p11 = por %p140_p7, %p115_p3  ;;  %p1457_p12 = pnand %p803_p8, %p148_p10 }
  0x1d   : > { %1716 = sst [smem:[#allocation19_spill]] %s1715_s30  ;;  %s1334_s6 = smov [#allocation5]  }
  0x1e   : > { %s1717_s4 = scalar_select %p1453_p11, 1, 0 }
  0x1f   : > { %s160_s7 = sshll.u32 %s1334_s6, 4  ;;  %p995_p13 = pneg %p1457_p12  ;;  %s161_s7 = int_to_ptr.vmem [resolvable:$true] %s160_s7 }
  0x20   : > { %1718 = sst [smem:[#allocation20_spill]] %s1717_s4  ;;  %s1135_s8 = scalar_lea.vmem %s161_s7, 1024 }
  0x21   : > { %p996_p0 = pnand %p995_p13, %p1422_p1  ;;  %p1136_p5 = scmp.ne.s32.totalorder %s161_s7, %s1135_s8 }
  0x22   : > { %p1143_p7 = scmp.lt.s32.totalorder %s161_s7, %s161_s7  ;;  %p1144_p4 = scmp.lt.s32.totalorder %s1135_s8, %s1135_s8 }
  0x23   : > { %p1126_p6 = pneg %p996_p0 }
  0x24   : > { %p1145_p11 = por %p1144_p4, %p1143_p7 }
  0x25   : > { %p1138_p9 = pnand %p1136_p5, %p1126_p6 }
  0x27   : > { %p1139_p3 = pneg %p1138_p9 }
  0x29   : > { %p1146_p8 = pnand %p1145_p11, %p1139_p3 }
  0x2b   : > { %1149 = shalt.err (!%p1146_p8)
}
  0x2c   : > { %s1689_s9 = smov 64   ;;  %s1690_s10 = smov 4  }
  0x2d   : > { %s1720_s1 = sld [smem:[#allocation23_spill]]  ;;  %s33_s24 = sadd.s32 1, %s1324_s20 }
  0x2e   : > { %s36_s6 = sadd.s32 1, %s1328_s21  ;;  %p34_p4 = scmp.ge.s32.totalorder %s33_s24, 2 }
  0x2f   : > { %s799_s8 = sshll.u32 %s1328_s21, 1  ;;  %s47_s4 = sadd.s32 1, %s1312_s17 }
  0x30   : > { %s41_s28 = sadd.s32 %s1324_s20, %s799_s8  ;;  %s1756_s24 = smov (%p34_p4, %s33_s24), 0 }
  0x31   : > { %s1758_s6 = smov (!%p34_p4, %s36_s6), %s1328_s21  ;;  %p54_p5 = scmp.ne.s32.totalorder %s1312_s17, %s1308_s16 }
  0x32   : > { %p55_p9 = scmp.eq.s32.totalorder %s1332_s22, 0  ;;  %p38_p10 = scmp.ge.s32.totalorder %s1758_s6, 2 }
  0x33   : > { %998 = dma.hbm_to_vmem [thread:$0]  (!%p996_p0), %s1720_s1, 1024, %s161_s7, [#allocation6], %s1689_s9, %s1689_s9, %s1690_s10  }
  0x34   : > { %p1011_p11 = scmp.lt.s32.totalorder %s1332_s22, 4  ;;  %p1483_p13 = por %p55_p9, %p54_p5 }
  0x35   : > { %p1489_p0 = por %p1426_p2, %p54_p5  ;;  %s1760_s6 = smov (%p38_p10, %s1758_s6), 0 }
  0x36   : > { %1724 = sst [smem:[#allocation22_spill]] %s1760_s6  ;;  %s174_s23 = sand.u32 1, %s1312_s17  }
  0x37   : > { %s1722_s11 = scalar_select %p1489_p0, 1, 0 }
  0x38   : > { %s856_s8 = sshll.u32 %s41_s28, 10  ;;  %s800_s9 = sshll.u32 %s1760_s6, 1 }
  0x39   : > { %1723 = sst [smem:[#allocation21_spill]] %s1722_s11  ;;  %s121_s10 = ssub.s32 %s1328_s21, %s1760_s6 }
  0x3a   : > { %s43_s1 = sadd.s32 %s800_s9, %s1756_s24  ;;  %p122_p6 = scmp.eq.s32.totalorder %s121_s10, 0 }
  0x3b   : > { %s44_s20 = ssub.s32 %s41_s28, %s43_s1  ;;  %s806_s12 = sshll.u32 %s174_s23, 6 }
  0x3c   : > { %p45_p3 = scmp.eq.s32.totalorder %s44_s20, 0  ;;  %s1725_s26 = sadd.s32 1, %s1300_s14 }
  0x3d   : > { %s1503_s29 = scalar_select %p122_p6, %s1300_s14, %s1725_s26  }
  0x3e   : > { %s1506_s15 = scalar_select %p45_p3, %s1312_s17, %s47_s4  }
  0x3f   : > { %s186_s11 = scalar_lea.hbm %s1682_s0, %s856_s8  ;;  %s178_s2 = scalar_lea.vmem [#allocation2], %s806_s12 }
  0x40   : > { %s187_s19 = sshll.u32 %s178_s2, 4  ;;  %p1515_p2 = pnand %p1011_p11, %p1483_p13  ;;  %s188_s19 = int_to_ptr.vmem [resolvable:$true] %s187_s19 }
  0x41   : > { %s175_s1 = scalar_lea.sflag [#allocation3], %s174_s23  ;;  %s1163_s20 = scalar_lea.vmem %s188_s19, 1024 }
  0x42   : > { %p1152_p7 = pneg %p1515_p2  ;;  %p1164_p8 = scmp.ne.s32.totalorder %s188_s19, %s1163_s20 }
  0x43   : > { %s1337_s28 = smov [#allocation2]  }
  0x44   : > { %p1166_p4 = pnand %p1164_p8, %p1152_p7  ;;  %s1168_s3 = sshll.u32 %s1337_s28, 4  ;;  %s1169_s3 = int_to_ptr.vmem [resolvable:$false] %s1168_s3 }
  0x45   : > { %s1170_s12 = scalar_lea.vmem %s1169_s3, 2048  ;;  %p1171_p9 = scmp.lt.s32.totalorder %s188_s19, %s1169_s3 }
  0x46   : > { %p1167_p5 = pneg %p1166_p4  ;;  %p1172_p10 = scmp.lt.s32.totalorder %s1170_s12, %s1163_s20 }
  0x48   : > { %p1173_p6 = por %p1172_p10, %p1171_p9 }
  0x4a   : > { %p1174_p11 = pnand %p1173_p6, %p1167_p5 }
  0x4c   : > { %1177 = shalt.err (!%p1174_p11)
}
  0x4d   : > { %s1727_s2 = smov 4   ;;  %s1728_s30 = smov 64  }
  0x4e   : > { %1002 = dma.hbm_to_vmem [thread:$0]  (!%p1515_p2), %s186_s11, 1024, %s188_s19, %s175_s1, %s1728_s30, %s1728_s30, %s1727_s2  }
  0x4f   : > { %199 = sbr.rel (%p1457_p12) target bundleno = 405 (0x195), region = 28  ;;  %s1529_s4 = sand.u32 (!%p1457_p12), 1, %s1308_s16  }
  0x50   : > { %s811_s9 = sshll.u32 (!%p1457_p12), %s1529_s4, 6  ;;  %s202_s10 = scalar_lea.sflag (!%p1457_p12), [#allocation3], %s1529_s4 }
  0x51   : > { %s1533_s7 = scalar_lea.vmem (!%p1457_p12), [#allocation2], %s811_s9  ;;  %p1729_p13 = scmp.ne.s32.totalorder (!%p1457_p12), %s1712_s27, 0 }
  0x54   : > { %1275 = dma.done.wait (%p1729_p13), %s202_s10, 1024  }
  0x55   : > { %1277 = vsyncadd (%p1729_p13), %s202_s10, 4294966272 }
  0x56   : > { %1279 = dma.done.wait (%p1422_p1), [#allocation6], 1024  }
  0x57   : > { %1281 = vsyncadd (%p1422_p1), [#allocation6], 4294966272  ;;  %s234_s19 = sand.u32 1, %s1296_s13   ;;  %s1546_s6 = scalar_lea.vmem [#allocation7], %s811_s9 }
  0x58   : > { %s814_s5 = sshll.u32 %s234_s19, 1  ;;  %p815_p12 = scmp.ne.s32.totalorder %s1316_s18, 0 }
  0x59   : > { %s1548_s11 = scalar_lea.vmem [#allocation8], %s814_s5 }
  0x5a   : > { %247 = sbr.rel (%p815_p12) target bundleno = 97 (0x61), region = 40 }
  0x5f   : > { %v1338_v0 = vmov 0.0  }
  0x60   : > { %248 = vst [vmem:[%s1548_s11] sm:$0x3] %v1338_v0 }
  0x61 PF: > { %v1108_v1 = vld [vmem:[#allocation5 + $0x38] sm:$0xff]   ;;  %v1109_v2 = vld [vmem:[#allocation5 + $0x30] sm:$0xff]   ;;  %v1110_v3 = vld [vmem:[#allocation5 + $0x28] sm:$0xff]   ;;  %s1730_s25 = sld [smem:[#allocation16_spill]]  ;;  %s654_s26 = sshll.u32 %s1546_s6, 4  ;;  %s1583_s26 = int_to_ptr.vmem [resolvable:$true] %s654_s26 }
  0x62   : > { %937 = vmatprep.subr.bf16.mxu0 %v1108_v1  ;;  %969 = vmatprep.subr.bf16.mxu1 %v1108_v1  ;;  %v1111_v4 = vld [vmem:[#allocation5 + $0x20] sm:$0xff]   ;;  %v1112_v6 = vld [vmem:[#allocation5 + $0x18] sm:$0xff]   ;;  %v1113_v8 = vld [vmem:[#allocation5 + $0x10] sm:$0xff]   ;;  %s1731_s20 = sld [smem:[#allocation24_spill]]  ;;  %s634_s2 = scalar_lea.sflag [#allocation4], %s1529_s4 }
  0x63   : > { %938 = vmatpush3.bf16.msra.mxu0 %v1108_v1  ;;  %977 = vmatpush3.bf16.msra.mxu1 %v1108_v1  ;;  %v1116_v5 = vld [vmem:[%s1533_s7] sm:$0xff]   ;;  %v1114_v9 = vld [vmem:[#allocation5 + $0x8] sm:$0xff]   ;;  %v1118_v13 = vld [vmem:[%s1533_s7 + $0x10] sm:$0xff]   ;;  %s1178_s30 = scalar_lea.vmem %s1583_s26, 1024  ;;  %s1339_s9 = smov [#allocation7]  }
  0x64   : > { %939 = vmatprep.subr.bf16.mxu0 %v1109_v2  ;;  %970 = vmatprep.subr.bf16.mxu1 %v1109_v2  ;;  %v1120_v7 = vld [vmem:[%s1533_s7 + $0x20] sm:$0xff]   ;;  %v1117_v11 = vld [vmem:[%s1533_s7 + $0x8] sm:$0xff]   ;;  %v1122_v14 = vld [vmem:[%s1533_s7 + $0x30] sm:$0xff]   ;;  %p1179_p1 = scmp.ne.s32.totalorder %s1583_s26, %s1178_s30  ;;  %s1182_s10 = sshll.u32 %s1339_s9, 4  ;;  %s1183_s10 = int_to_ptr.vmem [resolvable:$false] %s1182_s10 }
  0x65   : > { %953 = vmatprep.mubr.bf16.mxu0 %v1116_v5  ;;  %961 = vmatprep.mubr.bf16.mxu1 %v1120_v7  ;;  %v1115_v10 = vld [vmem:[#allocation5] sm:$0xff]   ;;  %v1121_v12 = vld [vmem:[%s1533_s7 + $0x28] sm:$0xff]   ;;  %v1119_v15 = vld [vmem:[%s1533_s7 + $0x18] sm:$0xff]   ;;  %p1185_p7 = scmp.lt.s32.totalorder %s1583_s26, %s1183_s10 }
  0x66   : > { %v1123_v16 = vld [vmem:[%s1533_s7 + $0x38] sm:$0xff]   ;;  %p1180_p3 = pnand %p1179_p1, %p1489_p0  ;;  %s1184_s7 = scalar_lea.vmem %s1183_s10, 2048 }
  0x67   : > { %940 = vmatpush3.bf16.msra.mxu0 %v1109_v2  ;;  %978 = vmatpush3.bf16.msra.mxu1 %v1109_v2  ;;  %s850_s27 = sshll.u32 %s1730_s25, 1  ;;  %p1186_p8 = scmp.lt.s32.totalorder %s1184_s7, %s1178_s30 }
  0x68   : > { %941 = vmatprep.subr.bf16.mxu0 %v1110_v3  ;;  %971 = vmatprep.subr.bf16.mxu1 %v1110_v3  ;;  %s647_s23 = sadd.s32 %s1316_s18, %s850_s27  ;;  %s1732_s28 = smov %s1731_s20 }
  0x69   : > { %s873_s8 = sshll.u32 %s647_s23, 10  ;;  %p1181_p2 = pneg %p1180_p3 }
  0x6a   : > { %s1581_s3 = scalar_lea.hbm %s1731_s20, %s873_s8  ;;  %p1187_p4 = por %p1186_p8, %p1185_p7 }
  0x6b   : > { %942 = vmatpush3.bf16.msra.mxu0 %v1110_v3  ;;  %979 = vmatpush3.bf16.msra.mxu1 %v1110_v3 }
  0x6c   : > { %943 = vmatprep.subr.bf16.mxu0 %v1111_v4  ;;  %972 = vmatprep.subr.bf16.mxu1 %v1111_v4  ;;  %p1188_p5 = pnand %p1187_p4, %p1181_p2 }
  0x6f   : > { %944 = vmatpush3.bf16.msra.mxu0 %v1111_v4  ;;  %980 = vmatpush3.bf16.msra.mxu1 %v1111_v4 }
  0x70   : > { %945 = vmatprep.subr.bf16.mxu0 %v1112_v6  ;;  %973 = vmatprep.subr.bf16.mxu1 %v1112_v6 }
  0x73   : > { %946 = vmatpush3.bf16.msra.mxu0 %v1112_v6  ;;  %981 = vmatpush3.bf16.msra.mxu1 %v1112_v6 }
  0x74   : > { %947 = vmatprep.subr.bf16.mxu0 %v1113_v8  ;;  %974 = vmatprep.subr.bf16.mxu1 %v1113_v8 }
  0x77   : > { %948 = vmatpush3.bf16.msra.mxu0 %v1113_v8  ;;  %982 = vmatpush3.bf16.msra.mxu1 %v1113_v8 }
  0x78   : > { %949 = vmatprep.subr.bf16.mxu0 %v1114_v9  ;;  %975 = vmatprep.subr.bf16.mxu1 %v1114_v9 }
  0x7b   : > { %950 = vmatpush3.bf16.msra.mxu0 %v1114_v9  ;;  %983 = vmatpush3.bf16.msra.mxu1 %v1114_v9 }
  0x7c   : > { %951 = vmatprep.subr.bf16.mxu0 %v1115_v10  ;;  %976 = vmatprep.subr.bf16.mxu1 %v1115_v10 }
  0x7f   : > { %952 = vmatpush3.bf16.msra.mxu0 %v1115_v10  ;;  %984 = vmatpush3.bf16.msra.mxu1 %v1115_v10 }
  0x82   : > { %954 = vmatmul.mubr.bf16.vlgmr.msra.gmra.mxu0 %v1117_v11  ;;  %962 = vmatmul.mubr.bf16.vlgmr.msra.gmra.mxu1 %v1121_v12 }
  0x83   : > { %957 = vmatprep.mubr.bf16.mxu0 %v1118_v13  ;;  %965 = vmatprep.mubr.bf16.mxu1 %v1122_v14 }
  0x8a   : > { %958 = vmatmul.mubr.bf16.gmra.mxu0 %v1119_v15  ;;  %966 = vmatmul.mubr.bf16.gmra.mxu1 %v1123_v16 }
 0x142   : > { %v955_v17 = vpop.f32.mrf.mxu0  ;;  %v963_v18 = vpop.f32.mrf.mxu1 }
 0x144   : > { %v411_v19 = vpop.f32.mrf.mxu0  ;;  %v443_v20 = vpop.f32.mrf.mxu1 }
 0x146   : > { %v956_v21 = vpop.f32.mrf.mxu0  ;;  %v964_v22 = vpop.f32.mrf.mxu1 }
 0x147   : > { %v475_v23 = vpack.c.bf16 %v956_v21, %v955_v17  ;;  %v1560_v24 = vpack.c.bf16 %v964_v22, %v963_v18 }
 0x148   : > { %v414_v25 = vpop.f32.mrf.mxu0  ;;  %v446_v26 = vpop.f32.mrf.mxu1 }
 0x149   : > { %914 = vst [vmem:[%s1546_s6 + $0x8] sm:$0xff] %v475_v23   ;;  %v474_v27 = vpack.c.bf16 %v414_v25, %v411_v19  ;;  %918 = vst [vmem:[%s1546_s6 + $0x28] sm:$0xff] %v1560_v24   ;;  %v556_v28 = vunpack.c.l.bf16 %v475_v23  ;;  %v1566_v30 = vpack.c.bf16 %v446_v26, %v443_v20  ;;  %v557_v39 = vunpack.c.h.bf16 %v475_v23 }
 0x14a   : > { %v959_v29 = vpop.f32.mrf.mxu0  ;;  %v967_v31 = vpop.f32.mrf.mxu1 }
 0x14b   : > { %878 = vst [vmem:[%s1546_s6] sm:$0xff] %v474_v27   ;;  %v554_v32 = vunpack.c.l.bf16 %v474_v27  ;;  %v555_v33 = vunpack.c.h.bf16 %v474_v27  ;;  %917 = vst [vmem:[%s1546_s6 + $0x20] sm:$0xff] %v1566_v30   ;;  %v593_v40 = vmul.f32 %v556_v28, %v556_v28  ;;  %v594_v52 = vmul.f32 %v557_v39, %v557_v39 }
 0x14c   : > { %v427_v34 = vpop.f32.mrf.mxu0  ;;  %v459_v35 = vpop.f32.mrf.mxu1 }
 0x14d   : > { %v570_v36 = vadd.f32 %v555_v33, %v554_v32  ;;  %v591_v37 = vmul.f32 %v554_v32, %v554_v32  ;;  %v592_v38 = vmul.f32 %v555_v33, %v555_v33 }
 0x14e   : > { %v960_v41 = vpop.f32.mrf.mxu0  ;;  %v968_v42 = vpop.f32.mrf.mxu1 }
 0x14f   : > { %v571_v43 = vadd.f32 %v570_v36, %v556_v28  ;;  %v607_v44 = vadd.f32 %v592_v38, %v591_v37  ;;  %v477_v45 = vpack.c.bf16 %v960_v41, %v959_v29  ;;  %v1573_v46 = vpack.c.bf16 %v968_v42, %v967_v31 }
 0x150   : > { %v430_v47 = vpop.f32.mrf.mxu0  ;;  %v462_v48 = vpop.f32.mrf.mxu1 }
 0x151   : > { %v608_v49 = vadd.f32 %v607_v44, %v593_v40  ;;  %916 = vst [vmem:[%s1546_s6 + $0x18] sm:$0xff] %v477_v45   ;;  %v476_v50 = vpack.c.bf16 %v430_v47, %v427_v34  ;;  %920 = vst [vmem:[%s1546_s6 + $0x38] sm:$0xff] %v1573_v46   ;;  %v1585_v51 = vpack.c.bf16 %v462_v48, %v459_v35  ;;  %v560_v56 = vunpack.c.l.bf16 %v477_v45 }
 0x152   : > { %v572_v55 = vadd.f32 %v571_v43, %v557_v39 }
 0x153   : > { %915 = vst [vmem:[%s1546_s6 + $0x10] sm:$0xff] %v476_v50   ;;  %v558_v53 = vunpack.c.l.bf16 %v476_v50  ;;  %v559_v54 = vunpack.c.h.bf16 %v476_v50  ;;  %919 = vst [vmem:[%s1546_s6 + $0x30] sm:$0xff] %v1585_v51   ;;  %v609_v59 = vadd.f32 %v608_v49, %v594_v52 }
 0x155   : > { %v573_v57 = vadd.f32 %v572_v55, %v558_v53  ;;  %v595_v58 = vmul.f32 %v558_v53, %v558_v53 }
 0x156   : > { %1191 = shalt.err (!%p1188_p5)
}
 0x157   : > { %s1192_s5 = scalar_lea.hbm %s1581_s3, 1024  ;;  %s1196_s23 = scalar_lea.hbm %s1732_s28, 4096 }
 0x158   : > { %p1193_p9 = scmp.ne.s32.totalorder %s1581_s3, %s1192_s5  ;;  %p1197_p11 = scmp.lt.s32.totalorder %s1581_s3, %s1732_s28 }
 0x159   : > { %p1198_p13 = scmp.lt.s32.totalorder %s1196_s23, %s1192_s5 }
 0x15a   : > { %p1194_p10 = pnand %p1193_p9, %p1489_p0 }
 0x15b   : > { %p1199_p12 = por %p1198_p13, %p1197_p11 }
 0x15c   : > { %p1195_p6 = pneg %p1194_p10 }
 0x15e   : > { %p1200_p1 = pnand %p1199_p12, %p1195_p6 }
 0x160   : > { %1203 = shalt.err (!%p1200_p1)
}
 0x161   : > { %s1340_s1 = smov 64   ;;  %s1341_s20 = smov 4   ;;  %v561_v60 = vunpack.c.h.bf16 %v477_v45  ;;  %v574_v61 = vadd.f32 %v573_v57, %v559_v54  ;;  %v596_v62 = vmul.f32 %v559_v54, %v559_v54  ;;  %v610_v63 = vadd.f32 %v609_v59, %v595_v58 }
 0x162   : > { %991 = dma.vmem_to_hbm [thread:$0]  (%p1489_p0), %s1583_s26, 1024, %s1581_s3, %s634_s2, %s1340_s1, %s1340_s1, %s1341_s20   ;;  %v597_v0 = vmul.f32 %v560_v56, %v560_v56  ;;  %v562_v3 = vunpack.c.l.bf16 %v1566_v30  ;;  %v563_v6 = vunpack.c.h.bf16 %v1566_v30  ;;  %v564_v8 = vunpack.c.l.bf16 %v1560_v24 }
 0x163   : > { %v575_v1 = vadd.f32 %v574_v61, %v560_v56  ;;  %v611_v2 = vadd.f32 %v610_v63, %v596_v62  ;;  %v598_v4 = vmul.f32 %v561_v60, %v561_v60  ;;  %v565_v12 = vunpack.c.h.bf16 %v1560_v24  ;;  %s1734_s4 = sld [smem:[#allocation19_spill]]  ;;  %s853_s26 = sshll.u32 %s1730_s25, 5 }
 0x164   : > { %v599_v10 = vmul.f32 %v562_v3, %v562_v3  ;;  %v600_v14 = vmul.f32 %v563_v6, %v563_v6  ;;  %v601_v16 = vmul.f32 %v564_v8, %v564_v8  ;;  %v566_v19 = vunpack.c.l.bf16 %v1585_v51  ;;  %s670_s3 = sshll.u32 %s1548_s11, 4  ;;  %s1735_s30 = sld [smem:[#allocation25_spill]]  ;;  %s671_s3 = int_to_ptr.vmem [resolvable:$true] %s670_s3 }
 0x165   : > { %v612_v5 = vadd.f32 %v611_v2, %v597_v0  ;;  %v576_v7 = vadd.f32 %v575_v1, %v561_v60  ;;  %v602_v20 = vmul.f32 %v565_v12, %v565_v12  ;;  %v567_v22 = vunpack.c.h.bf16 %v1585_v51  ;;  %v630_v51 = vld [vmem:[%s1548_s11] sm:$0x3]  ;;  %s639_s10 = scalar_lea.sflag [#allocation9], %s234_s19  ;;  %s1204_s7 = scalar_lea.vmem %s671_s3, 32 }
 0x166   : > { %v568_v25 = vunpack.c.l.bf16 %v1573_v46  ;;  %v603_v27 = vmul.f32 %v566_v19, %v566_v19  ;;  %v569_v24 = vunpack.c.h.bf16 %v1573_v46  ;;  %vm628_vm0 = vcmask 1040384   ;;  %p1205_p0 = scmp.ne.s32.totalorder %s671_s3, %s1204_s7  ;;  %s1342_s5 = smov [#allocation8]  }
 0x167   : > { %v577_v9 = vadd.f32 %v576_v7, %v562_v3  ;;  %v613_v11 = vadd.f32 %v612_v5, %v598_v4  ;;  %v604_v30 = vmul.f32 %v567_v22, %v567_v22  ;;  %s1208_s6 = sshll.u32 %s1342_s5, 4  ;;  %s1209_s6 = int_to_ptr.vmem [resolvable:$false] %s1208_s6 }
 0x168   : > { %v605_v32 = vmul.f32 %v568_v25, %v568_v25  ;;  %v606_v35 = vmul.f32 %v569_v24, %v569_v24  ;;  %s1210_s25 = scalar_lea.vmem %s1209_s6, 64  ;;  %p1211_p8 = scmp.lt.s32.totalorder %s671_s3, %s1209_s6 }
 0x169   : > { %v578_v13 = vadd.f32 %v577_v9, %v563_v6  ;;  %v614_v15 = vadd.f32 %v613_v11, %v599_v10  ;;  %p1736_p3 = scmp.ne.s32.totalorder %s1734_s4, 0  ;;  %p1212_p4 = scmp.lt.s32.totalorder %s1210_s25, %s1204_s7 }
 0x16a   : > { %s668_s9 = scalar_lea.hbm %s1735_s30, %s853_s26 }
 0x16b   : > { %v579_v17 = vadd.f32 %v578_v13, %v564_v8  ;;  %v615_v18 = vadd.f32 %v614_v15, %v600_v14  ;;  %p1206_p2 = pnand %p1205_p0, %p1736_p3  ;;  %p1213_p5 = por %p1212_p4, %p1211_p8 }
 0x16d   : > { %v616_v21 = vadd.f32 %v615_v18, %v601_v16  ;;  %v580_v23 = vadd.f32 %v579_v17, %v565_v12  ;;  %p1207_p7 = pneg %p1206_p2 }
 0x16f   : > { %v581_v26 = vadd.f32 %v580_v23, %v566_v19  ;;  %v617_v28 = vadd.f32 %v616_v21, %v602_v20  ;;  %p1214_p9 = pnand %p1213_p5, %p1207_p7 }
 0x171   : > { %v582_v29 = vadd.f32 %v581_v26, %v567_v22  ;;  %v618_v31 = vadd.f32 %v617_v28, %v603_v27 }
 0x173   : > { %v583_v33 = vadd.f32 %v582_v29, %v568_v25  ;;  %v619_v34 = vadd.f32 %v618_v31, %v604_v30 }
 0x175   : > { %v584_v36 = vadd.f32 %v583_v33, %v569_v24  ;;  %v620_v37 = vadd.f32 %v619_v34, %v605_v32 }
 0x177   : > { %v585_v38 = vrot.slane %v584_v36, 4  ;;  %v621_v39 = vadd.f32 %v620_v37, %v606_v35 }
 0x179   : > { %v586_v40 = vadd.f32 %v585_v38, %v584_v36  ;;  %v622_v41 = vrot.slane %v621_v39, 4 }
 0x17b   : > { %v587_v42 = vrot.slane %v586_v40, 2  ;;  %v623_v43 = vadd.f32 %v622_v41, %v621_v39 }
 0x17d   : > { %v588_v44 = vadd.f32 %v587_v42, %v586_v40  ;;  %v624_v45 = vrot.slane %v623_v43, 2 }
 0x17f   : > { %v589_v46 = vrot.slane %v588_v44, 1  ;;  %v625_v47 = vadd.f32 %v624_v45, %v623_v43 }
 0x181   : > { %v626_v48 = vrot.slane %v625_v47, 1  ;;  %v590_v49 = vadd.f32 %v589_v46, %v588_v44 }
 0x183   : > { %v627_v50 = vadd.f32 %v626_v48, %v625_v47 }
 0x185   : > { %v629_v52 = vsel %vm628_vm0, %v590_v49, %v627_v50 }
 0x186   : > { %v631_v53 = vadd.f32 %v630_v51, %v629_v52 }
 0x188   : > { %632 = vst [vmem:[%s1548_s11] sm:$0x3] %v631_v53 }
 0x189   : > { %1217 = shalt.err (!%p1214_p9)
}
 0x18a   : > { %s1218_s27 = scalar_lea.hbm %s668_s9, 32  ;;  %s1222_s23 = scalar_lea.hbm %s1735_s30, 64 }
 0x18b   : > { %p1219_p10 = scmp.ne.s32.totalorder %s668_s9, %s1218_s27  ;;  %p1223_p13 = scmp.lt.s32.totalorder %s668_s9, %s1735_s30 }
 0x18c   : > { %p1224_p12 = scmp.lt.s32.totalorder %s1222_s23, %s1218_s27 }
 0x18d   : > { %p1220_p6 = pnand %p1219_p10, %p1736_p3 }
 0x18e   : > { %p1225_p1 = por %p1224_p12, %p1223_p13 }
 0x18f   : > { %p1221_p11 = pneg %p1220_p6 }
 0x191   : > { %p1226_p0 = pnand %p1225_p1, %p1221_p11 }
 0x193   : > { %1229 = shalt.err (!%p1226_p0)
}
 0x194   : > { %992 = dma.vmem_to_hbm [thread:$0]  (%p1736_p3), %s671_s3, 32, %s668_s9, %s639_s10  }
 0x195 PF: > { %s1737_s1 = sld [smem:[#allocation15_spill]]  ;;  %p1013_p2 = scmp.ge.s32.totalorder %s1332_s22, 2 }
 0x196   : > { %s1738_s20 = sld [smem:[#allocation18_spill]] }
 0x19b   : > { %s682_s26 = sand.u32 1, %s1737_s1  }
 0x19c   : > { %p1739_p7 = scmp.ne.s32.totalorder %s1738_s20, 0  ;;  %s683_s12 = scalar_lea.sflag [#allocation4], %s682_s26 }
 0x19e   : > { %p1004_p8 = pnand %p1013_p2, %p1739_p7 }
 0x1a0   : > { %p1005_p4 = pneg %p1004_p8 }
 0x1a2   : > { %1283 = dma.done.wait (%p1005_p4), %s683_s12, 1024  }
 0x1a3   : > { %1285 = vsyncadd (%p1005_p4), %s683_s12, 4294966272  ;;  %s1740_s2 = sld [smem:[#allocation14_spill]] }
 0x1a4   : > { %s1741_s7 = sld [smem:[#allocation20_spill]] }
 0x1a9   : > { %s691_s5 = sand.u32 1, %s1740_s2  }
 0x1aa   : > { %p1742_p5 = scmp.ne.s32.totalorder %s1741_s7, 0  ;;  %s692_s4 = scalar_lea.sflag [#allocation9], %s691_s5 }
 0x1ac   : > { %p1007_p9 = pnand %p1013_p2, %p1742_p5 }
 0x1ae   : > { %p1008_p10 = pneg %p1007_p9 }
 0x1b0   : > { %1287 = dma.done.wait (%p1008_p10), %s692_s4, 32  }
 0x1b1   : > { %1289 = vsyncadd (%p1008_p10), %s692_s4, 4294967264  ;;  %s24_s22 = sadd.s32 1, %s1332_s22   ;;  %s1743_s3 = smov %s1506_s15 }
 0x1b2   : > { %p21_p3 = scmp.ge.s32.totalorder %s24_s22, 6   ;;  %s1744_s18 = sld [smem:[#allocation17_spill]] }
 0x1b3   : > { %s1745_s9 = sld [smem:[#allocation22_spill]]  ;;  %s1746_s12 = smov %s1296_s13 }
 0x1b4   : > { %s1747_s13 = smov %s1300_s14  ;;  %s1748_s14 = smov %s1503_s29 }
 0x1b5   : > { %s1749_s15 = smov %s1308_s16  ;;  %s1750_s16 = smov %s1312_s17 }
 0x1b6   : > { %s1751_s17 = smov %s1743_s3  ;;  %s1752_s19 = smov %s1328_s21 }
 0x1b7   : > { %s1753_s20 = smov %s1756_s24  ;;  %23 = sbr.rel (!%p21_p3) target bundleno = 16 (0x10), region = 98 }
 0x1b9   : > { %s1754_s21 = smov %s1745_s9 }
 0x1bc   :  { %697 = vsyncpa [#allocation3], 1 }
 0x1bd   :  { %699 = vsyncpa [#allocation3 + $0x1], 1 }
 0x1be   :  { %700 = vsyncpa [#allocation6], 1 }
 0x1bf   :  { %701 = vsyncpa [#allocation4], 1 }
 0x1c0   :  { %703 = vsyncpa [#allocation4 + $0x1], 1 }
 0x1c1   :  { %704 = vsyncpa [#allocation9], 1 }
 0x1c2   :  { %706 = vsyncpa [#allocation9 + $0x1], 1 }

</bundles_post_ra>
